<compile_context>
chip_gen: v7x
topology: tpu7x:2x2x1
jax: 0.10.0
libtpu: 0.0.40
codegen_flags: <defaults>
</compile_context>

<pallas_src>
import functools

import jax
import jax.numpy as jnp
from jax import lax
from jax.experimental import pallas as pl
from jax.experimental.pallas import tpu as pltpu


def _round_up(x, m):
    return ((x + m - 1) // m) * m


def time2vec_kernel(tau_ref, m_ref, b_ref, o_ref, *, pack, group_width, out_dim, use_cos):
    """Compute one (tbp, lane_w) lane-dense output block.

    tau_ref: (tbp, pack)      packed batch rows
    m_ref:   (pack, lane_w)   block-diagonal scatter matrix with W baked in
    b_ref:   (1, lane_w)      lane-tiled fused [b | b0] (pad lanes are 0)
    o_ref:   (tbp, lane_w)    lane-dense output block
    """
    lane_w = o_ref.shape[-1]
    tau = tau_ref[...]

    if pack == 1:
        # K == 1: a pure VPU broadcast FMA is cheaper than driving the MXU.
        z = tau * m_ref[...] + b_ref[...]
    else:
        # Tiny-K matmul on the otherwise-idle MXU: scatters each packed tau
        # column into its lane group and multiplies by W in a single op.
        # HIGHEST precision keeps f32 parity with the reference.
        z = jnp.dot(
            tau,
            m_ref[...],
            preferred_element_type=jnp.float32,
            precision=lax.Precision.HIGHEST,
        ) + b_ref[...]

    periodic = jnp.cos(z) if use_cos else jnp.sin(z)

    # Lane-index math at (1, lane_w): a single vreg of integer work per grid
    # step; broadcasting handles the sublane dim.  group_width is a power of
    # two whenever D <= 128, so the mod lowers to an AND.
    lane = lax.broadcasted_iota(jnp.int32, (1, lane_w), 1)
    is_periodic = (lane % group_width) < (out_dim - 1)

    # Last real column of each group is the linear (w0/b0) branch (raw z);
    # dead pad lanes (zero weight/bias) are dropped by the wrapper.
    o_ref[...] = jnp.where(is_periodic, periodic, z).astype(o_ref.dtype)


def time2vec(tau, w, b, w0, b0, *, activation="sin", block_rows=8192, out_dtype=None):
    """Time2Vec forward.

    tau: (B, 1) float; w/b: (1, out_dim-1); w0/b0: (1, 1).
    Returns (B, out_dim).  out_dtype defaults to float32 (matching the PyTorch
    module); pass jnp.bfloat16 to halve the output write traffic if downstream
    tolerates it.
    """
    tau = tau.astype(jnp.float32)
    B, in_features = tau.shape
    assert in_features == 1, "Time2Vec uses in_features == 1"
    out_dtype = jnp.dtype(out_dtype) if out_dtype is not None else tau.dtype

    W = jnp.concatenate([w, w0], axis=-1).astype(jnp.float32).reshape(-1)   # (D,)
    Bb = jnp.concatenate([b, b0], axis=-1).astype(jnp.float32).reshape(-1)  # (D,)
    D = int(W.shape[0])

    # ---- lane-dense layout ------------------------------------------------
    # Group width Dp >= D so each output row is a full multiple of 128 lanes
    # (unmasked full-width stores), pack = batch rows per 128-lane slab.
    if D <= 128:
        Dp = 1
        while Dp < D:
            Dp *= 2                      # smallest power of two >= D; divides 128
        pack = 128 // Dp
    else:
        Dp = _round_up(D, 128)
        pack = 1
    lane_w = pack * Dp

    # Per-group params padded to Dp (dead lanes get zero weight/bias).
    W_pad = jnp.pad(W, (0, Dp - D))
    Bb_pad = jnp.pad(Bb, (0, Dp - D))
    # Block-diagonal scatter matrix: M[g, g*Dp + c] = W_pad[c].
    M = jnp.kron(jnp.eye(pack, dtype=jnp.float32), W_pad[None, :])          # (pack, lane_w)
    Bb_tiled = jnp.tile(Bb_pad[None, :], (1, pack))                          # (1, lane_w)

    # ---- batch tiling ------------------------------------------------------
    block_rows = max(8, (int(block_rows) // 8) * 8)     # (8, .) divisibility
    Bp = pl.cdiv(B, pack)                                # packed-row count

    single_block_cap = min(block_rows, 2048)             # keep v7x's 2nd TC busy
    if Bp <= single_block_cap:
        tbp = _round_up(Bp, 8)                           # sublane-aligned single block
        bp_pad = tbp
    else:
        # At least 2 blocks so the batch axis can shard across TensorCores.
        tbp = min(block_rows, _round_up(pl.cdiv(Bp, 2), 8))

        # Keep the double-buffered working set (128-lane-padded tau + output)
        # comfortably under the 32 MiB default scoped-VMEM limit (v7x: 64 MiB
        # physical), so the pipeline never has to shrink buffering.
        def _vmem_bytes(t):
            return 2 * (t * 128 * 4 + t * lane_w * 4)

        while tbp > 8 and _vmem_bytes(tbp) > 24 * 1024 * 1024:
            tbp = max(8, (tbp // 2 // 8) * 8)
        bp_pad = _round_up(Bp, tbp)

    b_pad = bp_pad * pack

    tau_flat = tau.reshape(B)
    if b_pad != B:
        tau_flat = jnp.pad(tau_flat, (0, b_pad - B))
    # (bp_pad, pack): dense HBM reads for tau (vs a 1-lane-wide column).
    tau_packed = tau_flat.reshape(bp_pad, pack)

    grid = (bp_pad // tbp,)
    kernel = functools.partial(
        time2vec_kernel,
        pack=pack,
        group_width=Dp,
        out_dim=D,
        use_cos=(activation == "cos"),
    )

    cost = pl.CostEstimate(
        flops=int(2 * bp_pad * lane_w * pack + 2 * bp_pad * lane_w),
        transcendentals=int(bp_pad * lane_w),
        bytes_accessed=int(4 * (bp_pad * pack + pack * lane_w + lane_w)
                           + out_dtype.itemsize * bp_pad * lane_w),
    )

    out_packed = pl.pallas_call(
        kernel,
        out_shape=jax.ShapeDtypeStruct((bp_pad, lane_w), out_dtype),
        grid=grid,
        in_specs=[
            pl.BlockSpec((tbp, pack), lambda i: (i, 0)),
            pl.BlockSpec((pack, lane_w), lambda i: (0, 0)),
            pl.BlockSpec((1, lane_w), lambda i: (0, 0)),
        ],
        out_specs=pl.BlockSpec((tbp, lane_w), lambda i: (i, 0)),
        compiler_params=pltpu.CompilerParams(
            dimension_semantics=("parallel",),
        ),
        cost_estimate=cost,
    )(tau_packed, M, Bb_tiled)

    # Row-major reshape back to (b_pad, Dp) — free relayout.
    out = out_packed.reshape(b_pad, Dp)
    if Dp != D:
        out = out[:, :D]       # drop dead pad lanes (only when D doesn't divide 128)
    if b_pad != B:
        # TODO(synk): this slice is an extra full HBM copy of the output; callers
        # that keep B a multiple of pack*tbp (or consume the padded view) avoid it.
        out = out[:B]
    return out


def time2vec_ref(tau, w, b, w0, b0, activation="sin"):
    f = jnp.cos if activation == "cos" else jnp.sin
    v1 = f(jnp.matmul(tau, w) + b)
    v2 = jnp.matmul(tau, w0) + b0
    return jnp.concatenate([v1, v2], axis=-1)


if __name__ == "__main__":
    key = jax.random.PRNGKey(0)
    k_tau, k_w, k_b, k_w0, k_b0 = jax.random.split(key, 5)

    out_dim = 32
    in_features = 1  # Time2Vec always uses in_features=1

    # torch.randn-shaped deterministic params.
    w0 = jax.random.normal(k_w0, (in_features, 1), dtype=jnp.float32)
    b0 = jax.random.normal(k_b0, (in_features, 1), dtype=jnp.float32)
    w = jax.random.normal(k_w, (in_features, out_dim - 1), dtype=jnp.float32)
    b = jax.random.normal(k_b, (in_features, out_dim - 1), dtype=jnp.float32)

    # Small batch (not a multiple of pack=4): single-block path + padding.
    tau_small = jax.random.normal(k_tau, (10, in_features), dtype=jnp.float32)
    out_small = jax.block_until_ready(time2vec(tau_small, w, b, w0, b0))
    ref_small = time2vec_ref(tau_small, w, b, w0, b0)
    assert out_small.shape == (10, out_dim)
    assert jnp.allclose(out_small, ref_small, atol=1e-5, rtol=1e-5), "sin small mismatch"

    # Cosine activation variant (CosineActivation).
    out_cos = jax.block_until_ready(time2vec(tau_small, w, b, w0, b0, activation="cos"))
    ref_cos = time2vec_ref(tau_small, w, b, w0, b0, activation="cos")
    assert jnp.allclose(out_cos, ref_cos, atol=1e-5, rtol=1e-5), "cos mismatch"

    # Larger batch with a small block size to exercise the multi-block grid path.
    tau_big = jax.random.normal(k_tau, (2500, in_features), dtype=jnp.float32)
    out_big = jax.block_until_ready(time2vec(tau_big, w, b, w0, b0, block_rows=128))
    ref_big = time2vec_ref(tau_big, w, b, w0, b0)
    assert out_big.shape == (2500, out_dim)
    assert jnp.allclose(out_big, ref_big, atol=1e-5, rtol=1e-5), "sin big mismatch"

    print("KERNEL_OK")
</pallas_src>

<mosaic_0001>
module attributes {stable_mosaic.version = 11 : i64} {
  func.func @time2vec_kernel(%arg0: i32, %arg1: memref<8x4xf32, #tpu.memory_space<vmem>>, %arg2: memref<4x128xf32, #tpu.memory_space<vmem>>, %arg3: memref<1x128xf32, #tpu.memory_space<vmem>>, %arg4: memref<8x128xf32, #tpu.memory_space<vmem>>) attributes {dimension_semantics = [#tpu.dimension_semantics<parallel>], iteration_bounds = array<i64: 1>, scalar_prefetch = 0 : i64, scratch_operands = 0 : i64, tpu.core_type = #tpu.core_type<tc>, window_params = [{transform_indices = @transform_0, window_bounds = array<i64: 8, 4>}, {pipeline_mode = #tpu.pipeline_mode<synchronous>, transform_indices = @transform_1, window_bounds = array<i64: 4, 128>}, {pipeline_mode = #tpu.pipeline_mode<synchronous>, transform_indices = @transform_2, window_bounds = array<i64: 1, 128>}, {transform_indices = @transform_3, window_bounds = array<i64: 8, 128>}]} {
    %c0 = arith.constant 0 : index
    %c0_0 = arith.constant 0 : index
    %0 = vector.load %arg1[%c0, %c0_0] : memref<8x4xf32, #tpu.memory_space<vmem>>, vector<8x4xf32>
    %c0_1 = arith.constant 0 : index
    %c0_2 = arith.constant 0 : index
    %1 = vector.load %arg2[%c0_1, %c0_2] : memref<4x128xf32, #tpu.memory_space<vmem>>, vector<4x128xf32>
    %cst = arith.constant dense<0.000000e+00> : vector<8x128xf32>
    %2 = tpu.matmul %0, %1, %cst {dimension_numbers = #tpu.dot_dimension_numbers<[1], [0], [0], [1], [0, 0, 1, 1], [], []>, precision = #tpu.contract_precision<fp32>} : vector<8x4xf32>, vector<4x128xf32>, vector<8x128xf32> -> vector<8x128xf32>
    %c0_3 = arith.constant 0 : index
    %c0_4 = arith.constant 0 : index
    %3 = vector.load %arg3[%c0_3, %c0_4] : memref<1x128xf32, #tpu.memory_space<vmem>>, vector<1x128xf32>
    %4 = vector.broadcast %3 : vector<1x128xf32> to vector<8x128xf32>
    %5 = arith.addf %2, %4 : vector<8x128xf32>
    %6 = math.sin %5 : vector<8x128xf32>
    %7 = tpu.iota {dimensions = array<i32: 1>} : vector<1x128xi32>
    %c32_i32 = arith.constant 32 : i32
    %c0_i32 = arith.constant 0 : i32
    %8 = arith.cmpi eq, %c32_i32, %c0_i32 : i32
    %c1_i32 = arith.constant 1 : i32
    %9 = arith.select %8, %c1_i32, %c32_i32 : i32
    %10 = vector.broadcast %9 : i32 to vector<1x128xi32>
    %11 = arith.remsi %7, %10 : vector<1x128xi32>
    %c0_i32_5 = arith.constant 0 : i32
    %12 = vector.broadcast %c0_i32_5 : i32 to vector<1x128xi32>
    %13 = arith.cmpi ne, %11, %12 : vector<1x128xi32>
    %c0_i32_6 = arith.constant 0 : i32
    %14 = vector.broadcast %c0_i32_6 : i32 to vector<1x128xi32>
    %15 = arith.cmpi slt, %11, %14 : vector<1x128xi32>
    %c0_i32_7 = arith.constant 0 : i32
    %16 = arith.cmpi slt, %9, %c0_i32_7 : i32
    %17 = vector.broadcast %16 : i1 to vector<1x128xi1>
    %18 = vector.broadcast %17 : vector<1x128xi1> to vector<1x128xi1>
    %19 = arith.xori %15, %18 : vector<1x128xi1>
    %20 = arith.andi %19, %13 : vector<1x128xi1>
    %21 = vector.broadcast %9 : i32 to vector<1x128xi32>
    %22 = arith.addi %11, %21 : vector<1x128xi32>
    %23 = arith.select %20, %22, %11 : vector<1x128xi1>, vector<1x128xi32>
    %c31_i32 = arith.constant 31 : i32
    %24 = vector.broadcast %c31_i32 : i32 to vector<1x128xi32>
    %25 = arith.cmpi slt, %23, %24 : vector<1x128xi32>
    %26 = vector.shape_cast %25 : vector<1x128xi1> to vector<1x128xi1>
    %27 = vector.broadcast %26 : vector<1x128xi1> to vector<8x128xi1>
    %28 = arith.select %27, %6, %5 : vector<8x128xi1>, vector<8x128xf32>
    %c0_8 = arith.constant 0 : index
    %c0_9 = arith.constant 0 : index
    %29 = vector.load %arg4[%c0_8, %c0_9] : memref<8x128xf32, #tpu.memory_space<vmem>>, vector<8x128xf32>
    tpu.vector_store %arg4[%c0_8, %c0_9], %28 {strides = array<i32>} : memref<8x128xf32, #tpu.memory_space<vmem>>, vector<8x128xf32>,
    return
  }
  func.func @transform_0(%arg0: i32) -> (i32, i32) {
    %c0_i32 = arith.constant 0 : i32
    %c0_i32_0 = arith.constant 0 : i32
    return %arg0, %c0_i32 : i32, i32
  }
  func.func @transform_1(%arg0: i32) -> (i32, i32) {
    %c0_i32 = arith.constant 0 : i32
    %c0_i32_0 = arith.constant 0 : i32
    %c0_i32_1 = arith.constant 0 : i32
    return %c0_i32, %c0_i32_0 : i32, i32
  }
  func.func @transform_2(%arg0: i32) -> (i32, i32) {
    %c0_i32 = arith.constant 0 : i32
    %c0_i32_0 = arith.constant 0 : i32
    %c0_i32_1 = arith.constant 0 : i32
    return %c0_i32, %c0_i32_0 : i32, i32
  }
  func.func @transform_3(%arg0: i32) -> (i32, i32) {
    %c0_i32 = arith.constant 0 : i32
    %c0_i32_0 = arith.constant 0 : i32
    return %arg0, %c0_i32 : i32, i32
  }
}

</mosaic_0001>

<bundles_post_ra>
// kernel: tpu_custom_call.1
= control target key start
LH: loop header
LB: loop body
LE: loop exit
PB: predicated region body
PF: predicated region fallthrough
CT: control target
= control target key end

     0   :  { %vm28_vm0 = vcmask 1043456   ;;  %v713_v2 = vmov 0.0   ;;  %vm714_vm1 = vmmov 0   ;;  %vm24_vm2 = vcmask 31744   ;;  %s791_s0 = inlined_call_operand.vmem [shape: f32[8,4], index: 0, kind: input, shape index: {}]   ;;  %s792_s1 = inlined_call_operand.vmem [shape: f32[4,128], index: 1, kind: input, shape index: {}]   ;;  %s793_s2 = inlined_call_operand.vmem [shape: f32[1,128], index: 2, kind: input, shape index: {}]   ;;  %s794_s3 = inlined_call_operand.hbm [shape: f32[8,128], index: 3, kind: output, shape index: {}]  }
   0x1   :  { %v16_v0 = vld [vmem:[%s792_s1] sm:$0xf]  ;;  %647 = vmatprep.subr.mxu0 %v713_v2  ;;  %649 = vmatprep.mubr.msk.f32.mxu0 %vm714_vm1, %v713_v2 }
   0x2   :  { %v15_v1 = vld [vmem:[%s791_s0] sm:$0xff]  ;;  %v30_v3 = vsel %vm28_vm0, %v16_v0, 0 }
   0x3   :  { %8 = vsyncpa [#allocation3], 0  ;;  %v33_v4 = vand.u32 4294901760, %v30_v3  ;;  %v26_v5 = vsel %vm24_vm2, %v15_v1, 0  ;;  %632 = vmatprep.subr.mxu1 %v713_v2  ;;  %634 = vmatprep.mubr.msk.f32.mxu1 %vm714_vm1, %v713_v2  ;;  %v615_v17 = vld [vmem:[%s793_s2] ss:$0 sm:$0xff] }
   0x4   :  { %v98_v6 = vand.u32 4294901760, %v26_v5  ;;  %v715_v32 = vmov 683565275   ;;  %v716_v34 = vmov 2475754826   ;;  %s721_s2 = smov [#allocation2]  }
   0x5   :  { %v110_v7 = vsub.f32 %v30_v3, %v33_v4  ;;  %648 = vmatpush3.msra.mxu0 %v33_v4  ;;  %633 = vmatpush3.msra.mxu1 %v33_v4  ;;  %v717_v37 = vmov 2131351028   ;;  %v718_v40 = vmov 2102212464   ;;  %v719_v43 = vmov 920167782  }
   0x6   :  { %v99_v8 = vsub.f32 %v26_v5, %v98_v6  ;;  %637 = vmatprep.subr.mxu1 %v713_v2  ;;  %652 = vmatprep.subr.mxu0 %v713_v2  ;;  %v720_v46 = vmov 1326507024   ;;  %s607_s16 = sshll.u32 %s721_s2, 4  ;;  %s608_s16 = int_to_ptr.vmem [resolvable:$true] %s607_s16 }
   0x7   :  { %v111_v9 = vand.u32 4294901760, %v110_v7  ;;  %s689_s17 = scalar_lea.vmem %s608_s16, 128  ;;  %p694_p1 = scmp.lt.s32.totalorder %s608_s16, %s608_s16 }
   0x8   :  { %v100_v10 = vand.u32 4294901760, %v99_v8  ;;  %p690_p0 = scmp.ne.s32.totalorder %s608_s16, %s689_s17  ;;  %p695_p2 = scmp.lt.s32.totalorder %s689_s17, %s689_s17 }
   0x9   :  { %v112_v11 = vsub.f32 %v110_v7, %v111_v9 }
   0xa   :  { %650 = vmatmul.mubr.f32.vlgmr.msra.gmra.mrb[0].mxu0 %v100_v10  ;;  %v101_v12 = vsub.f32 %v99_v8, %v100_v10  ;;  %p696_p3 = por %p695_p2, %p694_p1 }
   0xb   :  { %v113_v13 = vand.u32 4294901760, %v112_v11  ;;  %653 = vmatpush3.msra.mxu0 %v111_v9  ;;  %654 = vmatprep.mubr.msk.f32.mxu0 %vm714_vm1, %v713_v2 }
   0xc   :  { %v102_v14 = vand.u32 4294901760, %v101_v12  ;;  %657 = vmatprep.subr.mxu0 %v713_v2  ;;  %p697_p4 = pnand %p696_p3, %p690_p0 }
   0xe   :  { %635 = vmatmul.mubr.f32.vlgmr.msra.gmra.mrb[0].mxu1 %v102_v14 }
   0xf   :  { %638 = vmatpush3.msra.mxu1 %v113_v13  ;;  %639 = vmatprep.mubr.msk.f32.mxu1 %vm714_vm1, %v713_v2 }
  0x10   :  { %642 = vmatprep.subr.mxu1 %v713_v2 }
  0x12   :  { %655 = vmatmul.mubr.f32.vlgmr.msra.gmra.mrb[0].mxu0 %v98_v6 }
  0x13   :  { %658 = vmatpush3.msra.mxu0 %v33_v4  ;;  %659 = vmatprep.mubr.msk.f32.mxu0 %vm714_vm1, %v713_v2 }
  0x16   :  { %640 = vmatmul.mubr.f32.vlgmr.msra.gmra.mrb[0].mxu1 %v98_v6 }
  0x17   :  { %643 = vmatpush3.msra.mxu1 %v110_v7  ;;  %644 = vmatprep.mubr.msk.f32.mxu1 %vm714_vm1, %v713_v2 }
  0x1a   :  { %660 = vmatmul.mubr.f32.vlgmr.msra.gmra.mrb[0].mxu0 %v98_v6 }
  0x1e   :  { %645 = vmatmul.mubr.f32.vlgmr.msra.gmra.mrb[0].mxu1 %v99_v8 }
  0xed   :  { %v474_v15 = vpop.f32.mrb[0].mxu0 }
  0xee   :  { %v661_v16 = vpop.f32.mrb[1].mxu0 }
  0xf1   :  { %v254_v18 = vpop.f32.mrb[0].mxu1 }
  0xf2   :  { %v662_v19 = vadd.f32 %v615_v17, %v254_v18  ;;  %v646_v20 = vpop.f32.mrb[1].mxu1 }
  0xf4   :  { %v757_v21 = vadd.f32 %v662_v19, %v474_v15 }
  0xf6   :  { %v481_v22 = vand.u32 2139095040, %v757_v21  ;;  %v478_v26 = vand.u32 2147483647, %v757_v21  ;;  %vm480_vm10 = vcmp.lt.s32.totalorder %v757_v21, 0  ;;  %vm570_vm0 = vweird.f32 %v757_v21 }
  0xf8   :  { %v482_v23 = vshrl.u32 %v481_v22, 23  ;;  %v485_v30 = vand.u32 8388607, %v478_v26  ;;  %vm479_vm11 = vcmp.le.f32.partialorder %v478_v26, 0.7853982 }
  0xfa   :  { %v616_v24 = vadd.s32 4294967169, %v482_v23  ;;  %v486_v48 = vor.u32 8388608, %v485_v30 }
  0xfc   :  { %v488_v25 = vadd.s32 1, %v616_v24  ;;  %v526_v62 = vshll.u32 %v486_v48, 8 }
  0xfe   :  { %vm489_vm3 = vcmp.gt.s32.totalorder %v488_v25, 0 }
  0xff   :  { %v490_v27 = vsel %vm489_vm3, %v488_v25, 0 }
 0x100   :  { %v492_v28 = vand.u32 31, %v490_v27  ;;  %v491_v31 = vshrl.u32 %v490_v27, 5 }
 0x102   :  { %v493_v29 = vsub.s32 32, %v492_v28  ;;  %v495_v33 = vshll.u32 %v715_v32, %v492_v28  ;;  %v498_v35 = vshll.u32 %v716_v34, %v492_v28  ;;  %v501_v39 = vshll.u32 %v717_v37, %v492_v28 }
 0x103   :  { %v504_v42 = vshll.u32 %v718_v40, %v492_v28  ;;  %v507_v45 = vshll.u32 %v719_v43, %v492_v28  ;;  %vm510_vm4 = vcmp.lt.s32.totalorder %v491_v31, 1  ;;  %vm513_vm5 = vcmp.lt.s32.totalorder %v491_v31, 4 }
 0x104   :  { %v496_v36 = vshrl.u32 %v716_v34, %v493_v29  ;;  %v499_v38 = vshrl.u32 %v717_v37, %v493_v29  ;;  %v502_v41 = vshrl.u32 %v718_v40, %v493_v29  ;;  %v505_v44 = vshrl.u32 %v719_v43, %v493_v29 }
 0x105   :  { %v508_v47 = vshrl.u32 %v720_v46, %v493_v29  ;;  %v494_v57 = vshrl.u32 %v715_v32, %v493_v29  ;;  %vm512_vm6 = vcmp.lt.s32.totalorder %v491_v31, 3  ;;  %vm511_vm7 = vcmp.lt.s32.totalorder %v491_v31, 2 }
 0x106   :  { %v497_v49 = vor.u32 %v496_v36, %v495_v33  ;;  %v500_v50 = vor.u32 %v499_v38, %v498_v35  ;;  %v503_v51 = vor.u32 %v502_v41, %v501_v39  ;;  %v506_v52 = vor.u32 %v505_v44, %v504_v42 }
 0x107   :  { %v509_v53 = vor.u32 %v508_v47, %v507_v45  ;;  %v582_v41 = vlaneseq }
 0x108   :  { %v515_v54 = vsel %vm513_vm5, %v503_v51, 2102212464  ;;  %v518_v55 = vsel %vm510_vm4, %v497_v49, %v500_v50  ;;  %v522_v56 = vsel %vm510_vm4, %v500_v50, %v503_v51  ;;  %v519_v58 = vsel %vm513_vm5, %v506_v52, 920167782 }
 0x109   :  { %v523_v59 = vsel %vm513_vm5, %v509_v53, 1326507024  ;;  %v520_v60 = vsel %vm512_vm6, %v503_v51, %v519_v58  ;;  %v514_v63 = vsel %vm510_vm4, %v494_v57, %v497_v49  ;;  %v516_v0 = vsel %vm512_vm6, %v500_v50, %v515_v54 }
 0x10a   :  { %v524_v61 = vsel %vm512_vm6, %v506_v52, %v523_v59  ;;  %v521_v1 = vsel %vm511_vm7, %v518_v55, %v520_v60  ;;  %v517_v7 = vsel %vm511_vm7, %v514_v63, %v516_v0  ;;  %v583_v43 = vand.u32 127, %v582_v41 }
 0x10b   :  { %v525_v2 = vsel %vm511_vm7, %v522_v56, %v524_v61  ;;  %v766_v5 = vmul.u32.u64.low %v526_v62, %v521_v1  ;;  %v767_v6 = vmul.u32.u64.high %v526_v62, %v521_v1, %v766_v5  ;;  %v533_v9 = vmul.u32 %v526_v62, %v517_v7 }
 0x10c   :  { %v763_v3 = vmul.u32.u64.low %v526_v62, %v525_v2  ;;  %v764_v4 = vmul.u32.u64.high %v526_v62, %v525_v2, %v763_v3  ;;  %v588_v46 = vand.u32 31, %v583_v43 }
 0x10d   :  { %v536_v8 = vadd.s32 1, %v767_v6 }
 0x10e   :  { %vm535_vm8 = vc.u32 %v764_v4, %v766_v5  ;;  %v534_v22 = vadd.s32 %v766_v5, %v764_v4  ;;  %vm596_vm15 = vcmp.lt.s32.totalorder %v588_v46, 31 }
 0x10f   :  { %v537_v10 = vsel %vm535_vm8, %v536_v8, %v767_v6 }
 0x110   :  { %v538_v11 = vadd.s32 %v537_v10, %v533_v9 }
 0x112   :  { %v539_v12 = vadd.s32 536870912, %v538_v11 }
 0x114   :  { %v540_v13 = vshrl.u32 %v539_v12, 30 }
 0x116   :  { %v541_v14 = vshll.u32 %v540_v13, 30  ;;  %v564_v35 = vsub.s32 4, %v540_v13 }
 0x118   :  { %v542_v15 = vsub.s32 %v538_v11, %v541_v14  ;;  %v565_v38 = vsel %vm480_vm10, %v564_v35, %v540_v13 }
 0x119   :  { %v567_v40 = vsel %vm479_vm11, 0, %v565_v38 }
 0x11a   :  { %v544_v16 = vsub.s32 0, %v542_v15  ;;  %v571_v42 = vadd.s32 3, %v567_v40 }
 0x11c   :  { %v617_v17 = vmin.u32 %v544_v16, %v542_v15  ;;  %v572_v44 = vand.u32 3, %v571_v42 }
 0x11e   :  { %v546_v18 = vclz %v617_v17  ;;  %vm577_vm12 = vcmp.eq.s32.totalorder %v572_v44, 2  ;;  %vm574_vm13 = vcmp.eq.s32.totalorder %v572_v44, 0  ;;  %vm573_vm14 = vcmp.lt.s32.totalorder %v572_v44, 2 }
 0x120   :  { %v618_v19 = vadd.s32 4294967294, %v546_v18 }
 0x122   :  { %vm619_vm9 = vcmp.lt.s32.totalorder %v618_v19, 0 }
 0x123   :  { %v549_v20 = vsel %vm619_vm9, 0, %v618_v19 }
 0x124   :  { %v550_v23 = vsub.s32 32, %v549_v20  ;;  %v554_v24 = vsub.s32 4294967266, %v549_v20  ;;  %v551_v25 = vshll.u32 %v542_v15, %v549_v20 }
 0x126   :  { %v552_v27 = vshrl.u32 %v534_v22, %v550_v23  ;;  %v555_v28 = vadd.s32 127, %v554_v24 }
 0x128   :  { %v553_v29 = vor.u32 %v552_v27, %v551_v25  ;;  %v556_v30 = vshll.u32 %v555_v28, 23 }
 0x12a   :  { %v557_v31 = vor.u32 4788187, %v556_v30  ;;  %v560_v33 = vcvt.s32.f32 %v553_v29 }
 0x12c   :  { %v558_v32 = vand.u32 2147483647, %v557_v31 }
 0x12e   :  { %v561_v34 = vmul.f32 %v560_v33, %v558_v32 }
 0x130   :  { %v562_v36 = vxor.u32 2147483648, %v561_v34 }
 0x132   :  { %v563_v37 = vsel %vm480_vm10, %v562_v36, %v561_v34 }
 0x133   :  { %v566_v39 = vsel %vm479_vm11, %v757_v21, %v563_v37 }
 0x134   :  { %685 = vcosq.f32 %v566_v39 }
 0x135   :  { %687 = vsinq.f32 %v566_v39 }
 0x13e   :  { %v686_v45 = vpop.eup %685 }
 0x13f   :  { %v688_v47 = vpop.eup %687  ;;  %v578_v48 = vxor.u32 2147483648, %v686_v45 }
 0x140   :  { %v575_v49 = vxor.u32 2147483648, %v688_v47 }
 0x141   :  { %v579_v50 = vsel %vm577_vm12, %v578_v48, %v688_v47 }
 0x142   :  { %v576_v26 = vsel %vm574_vm13, %v686_v45, %v575_v49 }
 0x143   :  { %v580_v51 = vsel %vm573_vm14, %v576_v26, %v579_v50 }
 0x144   :  { %v581_v52 = vsel %vm570_vm0, nan, %v580_v51 }
 0x145   :  { %v599_v53 = vsel %vm596_vm15, %v581_v52, %v757_v21 }
 0x146   :  { %600 = vst [vmem:[#allocation2] sm:$0xff] %v599_v53 }
 0x147   :  { %700 = shalt.err (!%p697_p4)
}
 0x148   :  { %s701_s20 = scalar_lea.hbm %s794_s3, 128 }
 0x149   :  { %p702_p5 = scmp.ne.s32.totalorder %s794_s3, %s701_s20  ;;  %p705_p6 = scmp.lt.u32.totalorder %s701_s20, %s794_s3 }
 0x14b   :  { %p707_p7 = pnand %p705_p6, %p702_p5 }
 0x14d   :  { %710 = shalt.err (!%p707_p7)
}
 0x14e   :  { %610 = dma.vmem_to_hbm [thread:$0]  %s608_s16, 128, %s794_s3, [#allocation3]  }
 0x14f   :  { %711 = dma.done.wait [#allocation3], 128  }
 0x150   :  { %712 = vsyncadd [#allocation3], 4294967168 }
 0x151   :  { %614 = vsyncpa [#allocation3], 1 }

</bundles_post_ra>
